<compile_context>
chip_gen: v7x
topology: tpu7x:2x2x1
jax: 0.10.0
libtpu: 0.0.40
codegen_flags: <defaults>
</compile_context>

<pallas_src>
import jax
import jax.numpy as jnp
import numpy as np
from jax.experimental import pallas as pl
from jax.experimental.pallas import tpu as pltpu


def _cm_grounding_kernel(l1_ref, l2_ref, s1_ref, s2_ref, u_ref, aw_ref):
    s1 = s1_ref[...].astype(jnp.float32)      # [Bblk, t1, D]
    s2 = s2_ref[...].astype(jnp.float32)      # [Bblk, t2, D]
    l1 = l1_ref[...]                          # [Bblk, 1, 1] int32
    l2 = l2_ref[...]                          # [Bblk, 1, 1] int32

    bblk, t1, _ = s1.shape
    t2 = s2.shape[1]

    # mean over t1 first (divides by t1, exactly like torch.mean), then a single
    # row dot per (b, j): elementwise multiply + lane (D) reduction.
    s1_mean = jnp.mean(s1, axis=1, keepdims=True)              # [Bblk, 1, D]
    m = jnp.sum(s2 * s1_mean, axis=-1, keepdims=True)          # [Bblk, t2, 1]

    # j-mask only; the i-mask collapses into the (l1 >= t1) gate below.
    j_idx = jax.lax.broadcasted_iota(jnp.int32, (bblk, t2, 1), 1)
    m = jnp.where(j_idx < l2, m, -jnp.inf)

    # softmax over t2; an all-(-inf) vector -> NaN -> 0 (PyTorch semantics).
    mx = jnp.max(m, axis=1, keepdims=True)                     # [Bblk, 1, 1]
    e = jnp.exp(m - mx)
    denom = jnp.sum(e, axis=1, keepdims=True)
    aw = e * pl.reciprocal(denom, approx=True)
    aw = jnp.where(jnp.isnan(aw), 0.0, aw)
    # l1 < t1  =>  every column mean contains -inf  =>  NaN softmax  =>  zeros.
    aw = jnp.where(l1 >= t1, aw, 0.0)                          # [Bblk, t2, 1]

    u_ref[...] = (aw * s2).astype(u_ref.dtype)                 # [Bblk, t2, D]
    aw_ref[...] = aw.astype(aw_ref.dtype)                      # [Bblk, t2, 1]


def _pick_block_b(B, t1, t2, D, vmem_budget_bytes):
    # f32 bytes per batch (s1 + s2 + u + aw + lengths), double-buffered.
    per_batch = 4 * (t1 * D + 2 * t2 * D + t2 + 2)
    cap = max(1, vmem_budget_bytes // (2 * per_batch))
    bb = min(B, int(cap))
    while B % bb:            # largest divisor of B not exceeding the cap
        bb -= 1
    return bb


def cm_grounding(s1, l1, s2, l2, *, block_b=None,
                 vmem_budget_bytes=8 * 1024 * 1024):
    """s1: [B, t1, D], l1: [B] int, s2: [B, t2, D], l2: [B] int
    returns (u_tile [B, t2, D] f32, a_weight [B, t2, 1] f32)."""
    B, t1, D = s1.shape
    _, t2, _ = s2.shape

    if block_b is None:
        block_b = _pick_block_b(B, t1, t2, D, vmem_budget_bytes)
    assert B % block_b == 0

    l1v = l1.astype(jnp.int32).reshape(B, 1, 1)
    l2v = l2.astype(jnp.int32).reshape(B, 1, 1)

    grid = (B // block_b,)

    def blk(*shape):
        return pl.BlockSpec(shape, lambda i: (i,) + (0,) * (len(shape) - 1))

    return pl.pallas_call(
        _cm_grounding_kernel,
        out_shape=(
            jax.ShapeDtypeStruct((B, t2, D), jnp.float32),
            jax.ShapeDtypeStruct((B, t2, 1), jnp.float32),
        ),
        grid=grid,
        in_specs=[
            blk(block_b, 1, 1),      # l1
            blk(block_b, 1, 1),      # l2
            blk(block_b, t1, D),     # s1
            blk(block_b, t2, D),     # s2
        ],
        out_specs=(
            blk(block_b, t2, D),     # u_tile
            blk(block_b, t2, 1),     # a_weight
        ),
        compiler_params=pltpu.CompilerParams(
            dimension_semantics=("parallel",)),
    )(l1v, l2v, s1, s2)


def _reference(s1, l1, s2, l2):
    """Pure-JAX reference mirroring the PyTorch module."""
    B, t1, D = s1.shape
    t2 = s2.shape[1]
    s = jnp.einsum('bid,bjd->bij', s1, s2)
    i = jnp.arange(t1)[None, :, None]
    j = jnp.arange(t2)[None, None, :]
    valid = (i < l1[:, None, None]) & (j < l2[:, None, None])
    s = jnp.where(valid, s, -jnp.inf)
    m = jnp.mean(s, axis=1)                            # [B, t2]
    mx = jnp.max(m, axis=1, keepdims=True)
    e = jnp.exp(m - mx)
    aw = e / jnp.sum(e, axis=1, keepdims=True)
    aw = jnp.where(jnp.isnan(aw), 0.0, aw)
    aw = aw[..., None]                                 # [B, t2, 1]
    return aw * s2, aw


if __name__ == "__main__":
    key = jax.random.PRNGKey(0)
    B, t1, t2, D = 4, 8, 8, 32

    k1, k2 = jax.random.split(key)
    s1 = jax.random.normal(k1, (B, t1, D), dtype=jnp.float32)
    s2 = jax.random.normal(k2, (B, t2, D), dtype=jnp.float32)
    # batch 0: full lengths          -> standard softmax path
    # batch 1: l1 < t1               -> all-(-inf) mean -> NaN softmax -> zeros
    # batch 2: l1 == t1, l2 < t2     -> softmax over a prefix of t2
    # batch 3: l1 == t1, l2 == 0     -> all columns masked -> NaN -> zeros
    l1 = jnp.array([t1, 5, t1, t1], dtype=jnp.int32)
    l2 = jnp.array([t2, 4, 4, 0], dtype=jnp.int32)

    u_tile, a_weight = cm_grounding(s1, l1, s2, l2)
    jax.block_until_ready(u_tile)
    jax.block_until_ready(a_weight)

    u_ref, aw_ref = _reference(s1, l1, s2, l2)
    np.testing.assert_allclose(np.asarray(a_weight), np.asarray(aw_ref),
                               rtol=1e-2, atol=1e-2)
    np.testing.assert_allclose(np.asarray(u_tile), np.asarray(u_ref),
                               rtol=1e-2, atol=1e-2)

    print("KERNEL_OK")
</pallas_src>

<mosaic_0001>
module attributes {stable_mosaic.version = 11 : i64} {
  func.func @_cm_grounding_kernel(%arg0: i32, %arg1: memref<4x1x1xi32, #tpu.memory_space<vmem>>, %arg2: memref<4x1x1xi32, #tpu.memory_space<vmem>>, %arg3: memref<4x8x32xf32, #tpu.memory_space<vmem>>, %arg4: memref<4x8x32xf32, #tpu.memory_space<vmem>>, %arg5: memref<4x8x32xf32, #tpu.memory_space<vmem>>, %arg6: memref<4x8x1xf32, #tpu.memory_space<vmem>>) attributes {dimension_semantics = [#tpu.dimension_semantics<parallel>], iteration_bounds = array<i64: 1>, scalar_prefetch = 0 : i64, scratch_operands = 0 : i64, tpu.core_type = #tpu.core_type<tc>, window_params = [{transform_indices = @transform_0, window_bounds = array<i64: 4, 1, 1>}, {transform_indices = @transform_1, window_bounds = array<i64: 4, 1, 1>}, {transform_indices = @transform_2, window_bounds = array<i64: 4, 8, 32>}, {transform_indices = @transform_3, window_bounds = array<i64: 4, 8, 32>}, {transform_indices = @transform_4, window_bounds = array<i64: 4, 8, 32>}, {transform_indices = @transform_5, window_bounds = array<i64: 4, 8, 1>}]} {
    %c0 = arith.constant 0 : index
    %c0_0 = arith.constant 0 : index
    %c0_1 = arith.constant 0 : index
    %0 = vector.load %arg3[%c0, %c0_0, %c0_1] : memref<4x8x32xf32, #tpu.memory_space<vmem>>, vector<4x8x32xf32>
    %c0_2 = arith.constant 0 : index
    %c0_3 = arith.constant 0 : index
    %c0_4 = arith.constant 0 : index
    %1 = vector.load %arg4[%c0_2, %c0_3, %c0_4] : memref<4x8x32xf32, #tpu.memory_space<vmem>>, vector<4x8x32xf32>
    %c0_5 = arith.constant 0 : index
    %c0_6 = arith.constant 0 : index
    %c0_7 = arith.constant 0 : index
    %2 = vector.load %arg1[%c0_5, %c0_6, %c0_7] : memref<4x1x1xi32, #tpu.memory_space<vmem>>, vector<4x1x1xi32>
    %c0_8 = arith.constant 0 : index
    %c0_9 = arith.constant 0 : index
    %c0_10 = arith.constant 0 : index
    %3 = vector.load %arg2[%c0_8, %c0_9, %c0_10] : memref<4x1x1xi32, #tpu.memory_space<vmem>>, vector<4x1x1xi32>
    %cst = arith.constant dense<0.000000e+00> : vector<4x32xf32>
    %4 = vector.multi_reduction <add>, %0, %cst [1] : vector<4x8x32xf32> to vector<4x32xf32>
    %5 = vector.shape_cast %4 : vector<4x32xf32> to vector<4x1x32xf32>
    %cst_11 = arith.constant 8.000000e+00 : f32
    %6 = vector.broadcast %cst_11 : f32 to vector<4x1x32xf32>
    %7 = arith.divf %5, %6 : vector<4x1x32xf32>
    %8 = vector.broadcast %7 : vector<4x1x32xf32> to vector<4x8x32xf32>
    %9 = arith.mulf %1, %8 : vector<4x8x32xf32>
    %cst_12 = arith.constant dense<0.000000e+00> : vector<4x8xf32>
    %10 = vector.multi_reduction <add>, %9, %cst_12 [2] : vector<4x8x32xf32> to vector<4x8xf32>
    %11 = vector.shape_cast %10 : vector<4x8xf32> to vector<4x8x1xf32>
    %12 = tpu.iota {dimensions = array<i32: 1>} : vector<4x8x1xi32>
    %13 = vector.broadcast %3 : vector<4x1x1xi32> to vector<4x8x1xi32>
    %14 = arith.cmpi slt, %12, %13 : vector<4x8x1xi32>
    %cst_13 = arith.constant 0xFF800000 : f32
    %15 = vector.broadcast %cst_13 : f32 to vector<4x8x1xf32>
    %16 = arith.select %14, %11, %15 : vector<4x8x1xi1>, vector<4x8x1xf32>
    %cst_14 = arith.constant dense<0xFF800000> : vector<4x1xf32>
    %17 = vector.multi_reduction <maximumf>, %16, %cst_14 [1] : vector<4x8x1xf32> to vector<4x1xf32>
    %18 = vector.shape_cast %17 : vector<4x1xf32> to vector<4x1x1xf32>
    %19 = vector.broadcast %18 : vector<4x1x1xf32> to vector<4x8x1xf32>
    %20 = arith.subf %16, %19 : vector<4x8x1xf32>
    %21 = math.exp %20 : vector<4x8x1xf32>
    %cst_15 = arith.constant dense<0.000000e+00> : vector<4x1xf32>
    %22 = vector.multi_reduction <add>, %21, %cst_15 [1] : vector<4x8x1xf32> to vector<4x1xf32>
    %23 = vector.shape_cast %22 : vector<4x1xf32> to vector<4x1x1xf32>
    %24 = tpu.reciprocal %23 {approx = true} : vector<4x1x1xf32> -> vector<4x1x1xf32>
    %25 = vector.broadcast %24 : vector<4x1x1xf32> to vector<4x8x1xf32>
    %26 = arith.mulf %21, %25 : vector<4x8x1xf32>
    %27 = arith.cmpf one, %26, %26 : vector<4x8x1xf32>
    %cst_16 = arith.constant 0.000000e+00 : f32
    %28 = vector.broadcast %cst_16 : f32 to vector<4x8x1xf32>
    %29 = arith.select %27, %28, %26 : vector<4x8x1xi1>, vector<4x8x1xf32>
    %c8_i32 = arith.constant 8 : i32
    %30 = vector.broadcast %c8_i32 : i32 to vector<4x1x1xi32>
    %31 = arith.cmpi sge, %2, %30 : vector<4x1x1xi32>
    %cst_17 = arith.constant 0.000000e+00 : f32
    %32 = vector.shape_cast %31 : vector<4x1x1xi1> to vector<4x1x1xi1>
    %33 = vector.broadcast %32 : vector<4x1x1xi1> to vector<4x8x1xi1>
    %34 = vector.broadcast %cst_17 : f32 to vector<4x8x1xf32>
    %35 = arith.select %33, %29, %34 : vector<4x8x1xi1>, vector<4x8x1xf32>
    %36 = vector.broadcast %35 : vector<4x8x1xf32> to vector<4x8x32xf32>
    %37 = arith.mulf %36, %1 : vector<4x8x32xf32>
    %c0_18 = arith.constant 0 : index
    %c0_19 = arith.constant 0 : index
    %c0_20 = arith.constant 0 : index
    %38 = vector.load %arg5[%c0_18, %c0_19, %c0_20] : memref<4x8x32xf32, #tpu.memory_space<vmem>>, vector<4x8x32xf32>
    tpu.vector_store %arg5[%c0_18, %c0_19, %c0_20], %37 {strides = array<i32>} : memref<4x8x32xf32, #tpu.memory_space<vmem>>, vector<4x8x32xf32>,
    %c0_21 = arith.constant 0 : index
    %c0_22 = arith.constant 0 : index
    %c0_23 = arith.constant 0 : index
    %39 = vector.load %arg6[%c0_21, %c0_22, %c0_23] : memref<4x8x1xf32, #tpu.memory_space<vmem>>, vector<4x8x1xf32>
    tpu.vector_store %arg6[%c0_21, %c0_22, %c0_23], %35 {strides = array<i32>} : memref<4x8x1xf32, #tpu.memory_space<vmem>>, vector<4x8x1xf32>,
    return
  }
  func.func @transform_0(%arg0: i32) -> (i32, i32, i32) {
    %c0_i32 = arith.constant 0 : i32
    %c0_i32_0 = arith.constant 0 : i32
    %c0_i32_1 = arith.constant 0 : i32
    return %arg0, %c0_i32, %c0_i32_0 : i32, i32, i32
  }
  func.func @transform_1(%arg0: i32) -> (i32, i32, i32) {
    %c0_i32 = arith.constant 0 : i32
    %c0_i32_0 = arith.constant 0 : i32
    %c0_i32_1 = arith.constant 0 : i32
    return %arg0, %c0_i32, %c0_i32_0 : i32, i32, i32
  }
  func.func @transform_2(%arg0: i32) -> (i32, i32, i32) {
    %c0_i32 = arith.constant 0 : i32
    %c0_i32_0 = arith.constant 0 : i32
    %c0_i32_1 = arith.constant 0 : i32
    return %arg0, %c0_i32, %c0_i32_0 : i32, i32, i32
  }
  func.func @transform_3(%arg0: i32) -> (i32, i32, i32) {
    %c0_i32 = arith.constant 0 : i32
    %c0_i32_0 = arith.constant 0 : i32
    %c0_i32_1 = arith.constant 0 : i32
    return %arg0, %c0_i32, %c0_i32_0 : i32, i32, i32
  }
  func.func @transform_4(%arg0: i32) -> (i32, i32, i32) {
    %c0_i32 = arith.constant 0 : i32
    %c0_i32_0 = arith.constant 0 : i32
    %c0_i32_1 = arith.constant 0 : i32
    return %arg0, %c0_i32, %c0_i32_0 : i32, i32, i32
  }
  func.func @transform_5(%arg0: i32) -> (i32, i32, i32) {
    %c0_i32 = arith.constant 0 : i32
    %c0_i32_0 = arith.constant 0 : i32
    %c0_i32_1 = arith.constant 0 : i32
    return %arg0, %c0_i32, %c0_i32_0 : i32, i32, i32
  }
}

</mosaic_0001>

<bundles_post_ra>
// kernel: tpu_custom_call.1
= control target key start
LH: loop header
LB: loop body
LE: loop exit
PB: predicated region body
PF: predicated region fallthrough
CT: control target
= control target key end

     0   :  { %11 = vsyncpa [#allocation3], 0  ;;  %s581_s0 = inlined_call_operand.vmem [shape: s32[4,1,1], index: 0, kind: input, shape index: {}]   ;;  %s582_s1 = inlined_call_operand.vmem [shape: s32[4,1,1], index: 1, kind: input, shape index: {}]   ;;  %s583_s2 = inlined_call_operand.hbm [shape: f32[4,8,32], index: 2, kind: input, shape index: {}]   ;;  %s584_s3 = inlined_call_operand.hbm [shape: f32[4,8,32], index: 3, kind: input, shape index: {}]   ;;  %s585_s4 = inlined_call_operand.hbm [shape: f32[4,8,32], index: 4, kind: output, shape index: {0}]   ;;  %s586_s5 = inlined_call_operand.vmem [shape: f32[4,8,1], index: 5, kind: output, shape index: {1}]  }
   0x1   :  { %12 = vsyncpa [#allocation6], 0 }
   0x2   :  { %13 = vsyncpa [#allocation4], 0  ;;  %s411_s18 = smov [#allocation2]   ;;  %s339_s22 = scalar_lea.hbm %s583_s2, 512 }
   0x3   :  { %s23_s19 = sshll.u32 %s411_s18, 4  ;;  %p340_p0 = scmp.ne.s32.totalorder %s583_s2, %s339_s22  ;;  %s24_s19 = int_to_ptr.vmem [resolvable:$true] %s23_s19 }
   0x4   :  { %p343_p1 = scmp.lt.u32.totalorder %s339_s22, %s583_s2 }
   0x6   :  { %p345_p2 = pnand %p343_p1, %p340_p0 }
   0x8   :  { %348 = shalt.err (!%p345_p2)
}
   0x9   :  { %s349_s27 = scalar_lea.vmem %s24_s19, 512  ;;  %p354_p4 = scmp.lt.s32.totalorder %s24_s19, %s24_s19 }
   0xa   :  { %p350_p3 = scmp.ne.s32.totalorder %s24_s19, %s349_s27  ;;  %p355_p5 = scmp.lt.s32.totalorder %s349_s27, %s349_s27 }
   0xc   :  { %p356_p6 = por %p355_p5, %p354_p4 }
   0xe   :  { %p357_p7 = pnand %p356_p6, %p350_p3 }
  0x10   :  { %360 = shalt.err (!%p357_p7)
}
  0x11   :  { %s412_s28 = smov 128   ;;  %s413_s29 = smov 8  }
  0x12   :  { %29 = dma.hbm_to_vmem [thread:$0]  %s583_s2, 512, %s24_s19, [#allocation3], %s412_s28, %s412_s28, %s413_s29  }
  0x13   :  { %s414_s7 = smov [#allocation5]   ;;  %s361_s11 = scalar_lea.hbm %s584_s3, 512 }
  0x14   :  { %s35_s8 = sshll.u32 %s414_s7, 4  ;;  %p362_p8 = scmp.ne.s32.totalorder %s584_s3, %s361_s11  ;;  %s36_s8 = int_to_ptr.vmem [resolvable:$true] %s35_s8 }
  0x15   :  { %p365_p9 = scmp.lt.u32.totalorder %s361_s11, %s584_s3 }
  0x17   :  { %p367_p10 = pnand %p365_p9, %p362_p8 }
  0x19   :  { %370 = shalt.err (!%p367_p10)
}
  0x1a   :  { %s371_s16 = scalar_lea.vmem %s36_s8, 512  ;;  %p376_p12 = scmp.lt.s32.totalorder %s36_s8, %s36_s8 }
  0x1b   :  { %p372_p11 = scmp.ne.s32.totalorder %s36_s8, %s371_s16  ;;  %p377_p13 = scmp.lt.s32.totalorder %s371_s16, %s371_s16 }
  0x1d   :  { %p378_p0 = por %p377_p13, %p376_p12 }
  0x1f   :  { %p379_p1 = pnand %p378_p0, %p372_p11 }
  0x21   :  { %382 = shalt.err (!%p379_p1)
}
  0x22   :  { %41 = dma.hbm_to_vmem [thread:$0]  %s584_s3, 512, %s36_s8, [#allocation6], %s412_s28, %s412_s28, %s413_s29  }
  0x23   :  { %405 = dma.done.wait [#allocation3], 512  }
  0x24   :  { %406 = vsyncadd [#allocation3], 4294966784 }
  0x25   :  { %407 = dma.done.wait [#allocation6], 512  }
  0x26   :  { %408 = vsyncadd [#allocation6], 4294966784  ;;  %vm64_vm0 = vcmask 261120   ;;  %v50_v0 = vld [vmem:[#allocation2 + $0x10] sm:$0xff]  ;;  %v48_v1 = vld [vmem:[#allocation2] sm:$0xff]  ;;  %v415_v48 = vmov 0   ;;  %v114_v49 = vlaneseq }
  0x27   :  { %v79_v2 = vsel %vm64_vm0, %v50_v0, 0.0  ;;  %v65_v3 = vsel %vm64_vm0, %v48_v1, 0.0  ;;  %v51_v4 = vld [vmem:[#allocation2 + $0x18] sm:$0xff]  ;;  %v49_v8 = vld [vmem:[#allocation2 + $0x8] sm:$0xff]  ;;  %v481_v30 = vld [vmem:[#allocation5 + $0x10] sm:$0xff]  ;;  %321 = vset.pattern.permute.xlu0 %v415_v48  ;;  %322 = vset.pattern.permute.xlu1 %v415_v48  ;;  %vm140_vm3 = vcmask 7168  }
  0x28   :  { %v80_v5 = vrot.slane %v79_v2, 4  ;;  %v66_v6 = vrot.slane %v65_v3, 4  ;;  %v86_v7 = vsel %vm64_vm0, %v51_v4, 0.0  ;;  %v72_v10 = vsel %vm64_vm0, %v49_v8, 0.0  ;;  %v483_v31 = vld [vmem:[#allocation5] sm:$0xff]  ;;  %v485_v35 = vld [vmem:[#allocation5 + $0x18] sm:$0xff] }
  0x29   :  { %v87_v9 = vrot.slane %v86_v7, 4  ;;  %v73_v13 = vrot.slane %v72_v10, 4  ;;  %v487_v38 = vld [vmem:[#allocation5 + $0x8] sm:$0xff]  ;;  %v499_v50 = vshrl.u32 %v114_v49, 7  ;;  %v313_v51 = vld [vmem:[%s582_s1 + $0x2] ss:$0 sm:$0xff] }
  0x2a   :  { %v81_v11 = vadd.f32 %v80_v5, %v79_v2  ;;  %v67_v12 = vadd.f32 %v66_v6, %v65_v3  ;;  %v311_v52 = vld [vmem:[%s582_s1] ss:$0 sm:$0xff]  ;;  %v314_v53 = vld [vmem:[%s582_s1 + $0x3] ss:$0 sm:$0xff]  ;;  %v312_v54 = vld [vmem:[%s582_s1 + $0x1] ss:$0 sm:$0xff] }
  0x2b   :  { %v88_v14 = vadd.f32 %v87_v9, %v86_v7  ;;  %v74_v17 = vadd.f32 %v73_v13, %v72_v10  ;;  %vm134_vm1 = vcmp.lt.s32.totalorder %v499_v50, %v313_v51  ;;  %vm132_vm2 = vcmp.lt.s32.totalorder %v499_v50, %v311_v52  ;;  %s416_s16 = smov [#allocation7]  }
  0x2c   :  { %v82_v15 = vrot.slane %v81_v11, 2  ;;  %v68_v16 = vrot.slane %v67_v12, 2  ;;  %vm135_vm4 = vcmp.lt.s32.totalorder %v499_v50, %v314_v53  ;;  %vm133_vm5 = vcmp.lt.s32.totalorder %v499_v50, %v312_v54  ;;  %s294_s2 = sshll.u32 %s416_s16, 4  ;;  %s295_s2 = int_to_ptr.vmem [resolvable:$true] %s294_s2 }
  0x2d   :  { %v89_v18 = vrot.slane %v88_v14, 2  ;;  %v75_v21 = vrot.slane %v74_v17, 2  ;;  %p388_p3 = scmp.lt.s32.totalorder %s295_s2, %s295_s2 }
  0x2e   :  { %v83_v19 = vadd.f32 %v82_v15, %v81_v11  ;;  %v69_v20 = vadd.f32 %v68_v16, %v67_v12 }
  0x2f   :  { %v90_v22 = vadd.f32 %v89_v18, %v88_v14  ;;  %v76_v25 = vadd.f32 %v75_v21, %v74_v17 }
  0x30   :  { %v84_v23 = vrot.slane %v83_v19, 1  ;;  %v70_v24 = vrot.slane %v69_v20, 1 }
  0x31   :  { %v91_v26 = vrot.slane %v90_v22, 1  ;;  %v77_v29 = vrot.slane %v76_v25, 1 }
  0x32   :  { %v85_v27 = vadd.f32 %v84_v23, %v83_v19  ;;  %v71_v28 = vadd.f32 %v70_v24, %v69_v20 }
  0x33   :  { %v92_v32 = vadd.f32 %v91_v26, %v90_v22  ;;  %v78_v36 = vadd.f32 %v77_v29, %v76_v25 }
  0x34   :  { %v96_v33 = vmul.f32 0.125, %v85_v27  ;;  %v94_v34 = vmul.f32 0.125, %v71_v28 }
  0x35   :  { %v97_v37 = vmul.f32 0.125, %v92_v32  ;;  %v95_v41 = vmul.f32 0.125, %v78_v36 }
  0x36   :  { %v100_v39 = vmul.f32 %v96_v33, %v481_v30  ;;  %v98_v40 = vmul.f32 %v94_v34, %v483_v31 }
  0x37   :  { %v101_v42 = vmul.f32 %v97_v37, %v485_v35  ;;  %v99_v45 = vmul.f32 %v95_v41, %v487_v38 }
  0x38   :  { %v108_v43 = vsel %vm64_vm0, %v100_v39, 0.0  ;;  %v102_v44 = vsel %vm64_vm0, %v98_v40, 0.0 }
  0x39   :  { %109 = vadd.xlane.f32.xlu1 %v108_v43  ;;  %103 = vadd.xlane.f32.xlu0 %v102_v44  ;;  %v111_v46 = vsel %vm64_vm0, %v101_v42, 0.0  ;;  %v105_v47 = vsel %vm64_vm0, %v99_v45, 0.0 }
  0x3d   :  { %112 = vadd.xlane.f32.xlu1 %v111_v46  ;;  %106 = vadd.xlane.f32.xlu0 %v105_v47 }
  0xc6   :  { %v110_v55 = vpop.xlane.xlu1 %109  ;;  %v104_v56 = vpop.xlane.xlu0 %103 }
  0xc7   :  { %v138_v57 = vsel %vm134_vm1, %v110_v55, -inf  ;;  %v136_v58 = vsel %vm132_vm2, %v104_v56, -inf }
  0xc8   :  { %v155_v59 = vsel %vm140_vm3, %v138_v57, -inf  ;;  %v141_v60 = vsel %vm140_vm3, %v136_v58, -inf }
  0xc9   :  { %v156_v61 = vrot.slane %v155_v59, 4  ;;  %v142_v62 = vrot.slane %v141_v60, 4 }
  0xca   :  { %v113_v63 = vpop.xlane.xlu1 %112  ;;  %v107_v0 = vpop.xlane.xlu0 %106 }
  0xcb   :  { %v157_v1 = vmax.f32 %v155_v59, %v156_v61  ;;  %v143_v2 = vmax.f32 %v141_v60, %v142_v62  ;;  %v139_v3 = vsel %vm135_vm4, %v113_v63, -inf  ;;  %v137_v4 = vsel %vm133_vm5, %v107_v0, -inf }
  0xcc   :  { %v162_v5 = vsel %vm140_vm3, %v139_v3, -inf  ;;  %v148_v6 = vsel %vm140_vm3, %v137_v4, -inf }
  0xcd   :  { %v158_v7 = vrot.slane %v157_v1, 2  ;;  %v144_v8 = vrot.slane %v143_v2, 2  ;;  %v163_v9 = vrot.slane %v162_v5, 4  ;;  %v149_v10 = vrot.slane %v148_v6, 4 }
  0xcf   :  { %v159_v11 = vmax.f32 %v157_v1, %v158_v7  ;;  %v145_v12 = vmax.f32 %v143_v2, %v144_v8  ;;  %v164_v13 = vmax.f32 %v162_v5, %v163_v9  ;;  %v150_v14 = vmax.f32 %v148_v6, %v149_v10  ;;  %v58_v5 = vld [vmem:[%s581_s0 + $0x2] sm:$0x1]  ;;  %v56_v6 = vld [vmem:[%s581_s0] sm:$0x1] }
  0xd0   :  { %vm227_vm6 = vcmp.ge.s32.totalorder %v58_v5, 8  ;;  %vm225_vm7 = vcmp.ge.s32.totalorder %v56_v6, 8 }
  0xd1   :  { %v160_v15 = vrot.slane %v159_v11, 1  ;;  %v146_v16 = vrot.slane %v145_v12, 1  ;;  %v165_v17 = vrot.slane %v164_v13, 2  ;;  %v151_v18 = vrot.slane %v150_v14, 2 }
  0xd3   :  { %v161_v19 = vmax.f32 %v159_v11, %v160_v15  ;;  %v147_v20 = vmax.f32 %v145_v12, %v146_v16  ;;  %v166_v21 = vmax.f32 %v164_v13, %v165_v17  ;;  %v152_v22 = vmax.f32 %v150_v14, %v151_v18  ;;  %v59_v11 = vld [vmem:[%s581_s0 + $0x3] sm:$0x1]  ;;  %v57_v13 = vld [vmem:[%s581_s0 + $0x1] sm:$0x1] }
  0xd4   :  { %v235_v12 = vsub.s32 0, %v499_v50  ;;  %v231_v14 = vsel %vm227_vm6, 1, %v415_v48  ;;  %v229_v15 = vsel %vm225_vm7, 1, %v415_v48  ;;  %vm228_vm8 = vcmp.ge.s32.totalorder %v59_v11, 8 }
  0xd5   :  { %v171_v23 = vsub.f32 %v138_v57, %v161_v19  ;;  %v169_v24 = vsub.f32 %v136_v58, %v147_v20  ;;  %v167_v25 = vrot.slane %v166_v21, 1  ;;  %v153_v26 = vrot.slane %v152_v22, 1 }
  0xd6   :  { %vm226_vm9 = vcmp.ge.s32.totalorder %v57_v13, 8  ;;  %v244_v16 = vrot.slane %v231_v14, %v235_v12  ;;  %v236_v17 = vrot.slane %v229_v15, %v235_v12  ;;  %v232_v18 = vsel %vm228_vm8, 1, %v415_v48 }
  0xd7   :  { %v177_v27 = vmul.f32 1.442695, %v171_v23  ;;  %v173_v28 = vmul.f32 1.442695, %v169_v24  ;;  %v168_v29 = vmax.f32 %v166_v21, %v167_v25  ;;  %v154_v32 = vmax.f32 %v152_v22, %v153_v26 }
  0xd8   :  { %v230_v20 = vsel %vm226_vm9, 1, %v415_v48  ;;  %vm251_vm10 = vcmp.eq.s32.totalorder %v244_v16, 1  ;;  %v248_v23 = vrot.slane %v232_v18, %v235_v12  ;;  %vm249_vm11 = vcmp.eq.s32.totalorder %v236_v17, 1 }
  0xd9   :  { %323 = vpow2.f32 %v177_v27  ;;  %v172_v33 = vsub.f32 %v139_v3, %v168_v29  ;;  %v170_v34 = vsub.f32 %v137_v4, %v154_v32  ;;  %v240_v24 = vrot.slane %v230_v20, %v235_v12 }
  0xda   :  { %325 = vpow2.f32 %v173_v28  ;;  %vm252_vm14 = vcmp.eq.s32.totalorder %v248_v23, 1 }
  0xdb   :  { %v179_v36 = vmul.f32 1.442695, %v172_v33  ;;  %v175_v37 = vmul.f32 1.442695, %v170_v34  ;;  %vm250_vm15 = vcmp.eq.s32.totalorder %v240_v24, 1 }
  0xdd   :  { %327 = vpow2.f32 %v179_v36 }
  0xde   :  { %329 = vpow2.f32 %v175_v37 }
  0xe3   :  { %v324_v39 = vpop.eup %323 }
  0xe4   :  { %v326_v40 = vpop.eup %325  ;;  %v195_v41 = vsel %vm140_vm3, %v324_v39, 0.0 }
  0xe5   :  { %v196_v42 = vrot.slane %v195_v41, 4  ;;  %v181_v43 = vsel %vm140_vm3, %v326_v40, 0.0 }
  0xe6   :  { %v182_v44 = vrot.slane %v181_v43, 4 }
  0xe7   :  { %v328_v45 = vpop.eup %327  ;;  %v197_v46 = vadd.f32 %v196_v42, %v195_v41 }
  0xe8   :  { %v330_v47 = vpop.eup %329  ;;  %v183_v49 = vadd.f32 %v182_v44, %v181_v43  ;;  %v202_v51 = vsel %vm140_vm3, %v328_v45, 0.0 }
  0xe9   :  { %v198_v52 = vrot.slane %v197_v46, 2  ;;  %v203_v53 = vrot.slane %v202_v51, 4  ;;  %v188_v54 = vsel %vm140_vm3, %v330_v47, 0.0 }
  0xea   :  { %v184_v55 = vrot.slane %v183_v49, 2  ;;  %v189_v56 = vrot.slane %v188_v54, 4 }
  0xeb   :  { %v199_v57 = vadd.f32 %v198_v52, %v197_v46  ;;  %v204_v58 = vadd.f32 %v203_v53, %v202_v51 }
  0xec   :  { %v185_v59 = vadd.f32 %v184_v55, %v183_v49  ;;  %v190_v60 = vadd.f32 %v189_v56, %v188_v54 }
  0xed   :  { %v205_v61 = vrot.slane %v204_v58, 2  ;;  %v200_v62 = vrot.slane %v199_v57, 1 }
  0xee   :  { %v191_v63 = vrot.slane %v190_v60, 2  ;;  %v186_v0 = vrot.slane %v185_v59, 1 }
  0xef   :  { %v206_v1 = vadd.f32 %v205_v61, %v204_v58  ;;  %v201_v2 = vadd.f32 %v200_v62, %v199_v57 }
  0xf0   :  { %v192_v3 = vadd.f32 %v191_v63, %v190_v60  ;;  %v187_v4 = vadd.f32 %v186_v0, %v185_v59 }
  0xf1   :  { %331 = vrcp.f32 %v201_v2  ;;  %v207_v7 = vrot.slane %v206_v1, 1 }
  0xf2   :  { %333 = vrcp.f32 %v187_v4  ;;  %v193_v8 = vrot.slane %v192_v3, 1 }
  0xf3   :  { %v208_v9 = vadd.f32 %v207_v7, %v206_v1 }
  0xf4   :  { %v194_v10 = vadd.f32 %v193_v8, %v192_v3 }
  0xf5   :  { %335 = vrcp.f32 %v208_v9 }
  0xf6   :  { %337 = vrcp.f32 %v194_v10 }
  0xfb   :  { %v332_v19 = vpop.eup %331 }
  0xfc   :  { %v334_v50 = vpop.eup %333  ;;  %v215_v21 = vmul.f32 %v332_v19, %v324_v39 }
  0xfd   :  { %v213_v22 = vmul.f32 %v334_v50, %v326_v40 }
  0xfe   :  { %vm219_vm12 = vcmp.ne.f32.partialorder %v215_v21, %v215_v21 }
  0xff   :  { %v336_v25 = vpop.eup %335  ;;  %vm217_vm13 = vcmp.ne.f32.partialorder %v213_v22, %v213_v22  ;;  %v223_v26 = vsel %vm219_vm12, 0.0, %v215_v21 }
 0x100   :  { %v338_v27 = vpop.eup %337  ;;  %v221_v28 = vsel %vm217_vm13, 0.0, %v213_v22  ;;  %v255_v29 = vsel %vm251_vm10, %v223_v26, 0.0  ;;  %v216_v32 = vmul.f32 %v336_v25, %v328_v45 }
 0x101   :  { %v253_v33 = vsel %vm249_vm11, %v221_v28, 0.0  ;;  %v214_v34 = vmul.f32 %v338_v27, %v330_v47  ;;  %287 = vst.msk [vmem:[%s586_s5 + $0x10] sm:$0xff] %vm140_vm3, %v255_v29 }
 0x102   :  { %259 = vperm.xlu0 %321, %v253_v33   ;;  %285 = vst.msk [vmem:[%s586_s5] sm:$0xff] %vm140_vm3, %v253_v33  ;;  %vm220_vm1 = vcmp.ne.f32.partialorder %v216_v32, %v216_v32 }
 0x103   :  { %vm218_vm2 = vcmp.ne.f32.partialorder %v214_v34, %v214_v34  ;;  %v224_v48 = vsel %vm220_vm1, 0.0, %v216_v32 }
 0x104   :  { %v222_v36 = vsel %vm218_vm2, 0.0, %v214_v34  ;;  %v256_v37 = vsel %vm252_vm14, %v224_v48, 0.0 }
 0x105   :  { %v254_v39 = vsel %vm250_vm15, %v222_v36, 0.0  ;;  %288 = vst.msk [vmem:[%s586_s5 + $0x18] sm:$0xff] %vm140_vm3, %v256_v37 }
 0x106   :  { %264 = vperm.xlu1 %322, %v254_v39   ;;  %286 = vst.msk [vmem:[%s586_s5 + $0x8] sm:$0xff] %vm140_vm3, %v254_v39  ;;  %s383_s5 = scalar_lea.vmem %s295_s2, 512 }
 0x107   :  { %p384_p2 = scmp.ne.s32.totalorder %s295_s2, %s383_s5  ;;  %p389_p4 = scmp.lt.s32.totalorder %s383_s5, %s383_s5 }
 0x109   :  { %p390_p5 = por %p389_p4, %p388_p3 }
 0x10a   :  { %269 = vperm.xlu1 %322, %v255_v29  }
 0x10b   :  { %p391_p6 = pnand %p390_p5, %p384_p2 }
 0x10e   :  { %274 = vperm.xlu1 %322, %v256_v37  }
 0x181   :  { %v260_v40 = vpop.permute.xlu0 %259 }
 0x182   :  { %v277_v41 = vmul.f32 %v260_v40, %v483_v31 }
 0x184   :  { %281 = vst.msk [vmem:[#allocation7] sm:$0xff] %vm64_vm0, %v277_v41 }
 0x185   :  { %v265_v42 = vpop.permute.xlu1 %264 }
 0x186   :  { %v278_v43 = vmul.f32 %v265_v42, %v487_v38 }
 0x188   :  { %282 = vst.msk [vmem:[#allocation7 + $0x8] sm:$0xff] %vm64_vm0, %v278_v43 }
 0x189   :  { %v270_v44 = vpop.permute.xlu1 %269 }
 0x18a   :  { %v279_v45 = vmul.f32 %v270_v44, %v481_v30 }
 0x18c   :  { %283 = vst.msk [vmem:[#allocation7 + $0x10] sm:$0xff] %vm64_vm0, %v279_v45 }
 0x18d   :  { %v275_v46 = vpop.permute.xlu1 %274 }
 0x18e   :  { %v280_v47 = vmul.f32 %v275_v46, %v485_v35 }
 0x190   :  { %284 = vst.msk [vmem:[#allocation7 + $0x18] sm:$0xff] %vm64_vm0, %v280_v47 }
 0x191   :  { %394 = shalt.err (!%p391_p6)
}
 0x192   :  { %s395_s18 = scalar_lea.hbm %s585_s4, 512 }
 0x193   :  { %p396_p7 = scmp.ne.s32.totalorder %s585_s4, %s395_s18  ;;  %p399_p8 = scmp.lt.u32.totalorder %s395_s18, %s585_s4 }
 0x195   :  { %p401_p9 = pnand %p399_p8, %p396_p7 }
 0x197   :  { %404 = shalt.err (!%p401_p9)
}
 0x198   :  { %300 = dma.vmem_to_hbm [thread:$0]  %s295_s2, 512, %s585_s4, [#allocation4], %s412_s28, %s412_s28, %s413_s29  }
 0x199   :  { %409 = dma.done.wait [#allocation4], 512  }
 0x19a   :  { %410 = vsyncadd [#allocation4], 4294966784 }
 0x19b   :  { %308 = vsyncpa [#allocation3], 1 }
 0x19c   :  { %309 = vsyncpa [#allocation6], 1 }
 0x19d   :  { %310 = vsyncpa [#allocation4], 1 }

</bundles_post_ra>
